<compile_context>
chip_gen: v5e
topology: v5e:2x2
jax: 0.10.0
libtpu: 0.0.40
codegen_flags: <defaults>
</compile_context>

<pallas_src>
import math

import jax
import jax.numpy as jnp
import numpy as np
from jax.experimental import pallas as pl
from jax.experimental.pallas import tpu as pltpu

_GELU_K = math.sqrt(math.pi / 2)   # original PyTorch code uses sqrt(pi/2), not sqrt(2/pi).


def _gelu(x):
    # 0.5*x*(1 + tanh(K*(x + 0.044715*x^3))), cube rewritten as x*(1+0.044715*x^2) to
    # shave VALU ops (tanh itself runs on the EUP slot).
    x2 = x * x
    return 0.5 * x * (1.0 + jnp.tanh(_GELU_K * (x * (1.0 + 0.044715 * x2))))


def _round_up(x, m):
    return ((x + m - 1) // m) * m


# ----------------------------- Pallas kernel: fused l2r + r2l REL MLP ----------------
def _make_rel_kernel(R, C, OUT, TM, approx_recip):
    pad_cols = OUT - 2 * (R + C)

    def kernel(a_ref, b_ref, c_ref, w1ab_ref, w1c_ref, w2_ref, wc_ref, bc_ref, out_ref):
        f32 = jnp.float32
        cdt = w2_ref.dtype                     # matmul-input dtype (f32, or bf16 fast path)
        Hp = w1c_ref.shape[1]                  # lane-padded hidden width

        a = a_ref[...]
        b = b_ref[...]
        c = c_ref[...]

        # hidden_layer1 (no bias).  Both pair orderings reuse the same partial products:
        #   l2r = [a|b|ctx] @ W1 = a@W1a + b@W1b + ctx@W1c
        #   r2l = [b|a|ctx] @ W1 = b@W1a + a@W1b + ctx@W1c
        # W1a|W1b are pre-concatenated along N (2*Hp wide) so each dot feeds the full
        # 256-wide MXU on v6e/v7x instead of four N=128 matmuls.
        pa = jnp.dot(a, w1ab_ref[...], preferred_element_type=f32)    # (TM, 2*Hp)
        pb = jnp.dot(b, w1ab_ref[...], preferred_element_type=f32)    # (TM, 2*Hp)
        pc = jnp.dot(c, w1c_ref[...], preferred_element_type=f32)     # (TM, Hp)
        s_lr = pa[:, :Hp] + pb[:, Hp:] + pc
        s_rl = pb[:, :Hp] + pa[:, Hp:] + pc

        # Stack both directions along M so hidden_layer2 / l_class push their RHS once.
        h = _gelu(jnp.concatenate([s_lr, s_rl], axis=0))               # (2*TM, Hp), f32
        r = _gelu(jnp.dot(h.astype(cdt), w2_ref[...],
                          preferred_element_type=f32))                 # (2*TM, R)
        logits = (jnp.dot(r.astype(cdt), wc_ref[...], preferred_element_type=f32)
                  + bc_ref[...].astype(f32))                           # (2*TM, C)

        # softmax(dim=1)
        m = jnp.max(logits, axis=-1, keepdims=True)
        e = jnp.exp(logits - m)
        s = jnp.sum(e, axis=-1, keepdims=True)
        probs = e * pl.reciprocal(s, approx=approx_recip)

        # Packed, lane-dense output slab: [rel_lr | rel_rl | probs_lr | probs_rl | 0-pad].
        odt = out_ref.dtype
        out_ref[:, 0:R] = r[:TM].astype(odt)
        out_ref[:, R:2 * R] = r[TM:].astype(odt)
        out_ref[:, 2 * R:2 * R + C] = probs[:TM].astype(odt)
        out_ref[:, 2 * R + C:2 * (R + C)] = probs[TM:].astype(odt)
        if pad_cols:  # static
            out_ref[:, 2 * (R + C):] = jnp.zeros((TM, pad_cols), odt)

    return kernel


def rel_pair_mlp(p4c_flat, sent_embeds, row_a, row_b, row_ctx, w1, w2, wc, bc,
                 *, use_bf16=False, approx_softmax=None, tm=512):
    """Fused hidden_layer1 -> gelu -> hidden_layer2 -> gelu -> l_class -> softmax for BOTH
    pair orderings (l2r and r2l) in a single pallas_call.

    The pair gather happens here, directly into the row-padded / compute-dtype layout, so
    no separate pad/astype pass over the (P, ~2*ent_dim+bert_dim) features is emitted."""
    P = int(row_a.shape[0])
    NE, ent_dim = p4c_flat.shape
    bert_dim = sent_embeds.shape[1]
    H, R, C = w1.shape[1], w2.shape[1], wc.shape[1]
    if approx_softmax is None:
        approx_softmax = use_bf16

    Hp = _round_up(H, 128)
    OUT = _round_up(2 * (R + C), 128)          # one packed 128-lane output slab per pair

    # hidden_layer1 weight split into the [ent_a | ent_b | ctx] row blocks; the a/b blocks
    # are concatenated along N for 256-wide MXU matmuls.  Zero-padding of the hidden dim
    # is an exact no-op through gelu / the next matmul.
    # NOTE: in a real model these reshaped weights would be computed once and cached.
    w1a = jnp.pad(w1[:ent_dim], ((0, 0), (0, Hp - H)))
    w1b = jnp.pad(w1[ent_dim:2 * ent_dim], ((0, 0), (0, Hp - H)))
    w1c = jnp.pad(w1[2 * ent_dim:], ((0, 0), (0, Hp - H)))
    w1ab = jnp.concatenate([w1a, w1b], axis=1)                  # (ent_dim, 2*Hp)
    w2p = jnp.pad(w2, ((0, Hp - H), (0, 0)))                    # (Hp, R)
    bc2 = bc.reshape(1, C).astype(jnp.float32)                  # class bias stays f32

    # Row tile: big tiles amortize the ~0.35us/grid-step overhead; cap at ceil(P/2) so the
    # grid has >= 2 steps whenever P allows it (both TensorCores busy on v7x megacore).
    TM = max(16, min(_round_up(tm, 16), _round_up(-(-P // 2), 16)))
    P_pad = _round_up(max(P, 1), TM)

    cdt = jnp.bfloat16 if use_bf16 else p4c_flat.dtype
    odt = jnp.bfloat16 if use_bf16 else jnp.float32

    # Pad the tiny index vectors (not the feature matrices) and cast the small
    # (b*e, ent_dim) table BEFORE the gather: the gather directly materializes the padded,
    # compute-dtype a/b/ctx with no extra HBM pass.  Pad rows gather row 0 (harmless,
    # sliced off below).
    pad = P_pad - P
    if pad:
        row_a = jnp.pad(row_a, (0, pad))
        row_b = jnp.pad(row_b, (0, pad))
        row_ctx = jnp.pad(row_ctx, (0, pad))
    p4c_src = p4c_flat.astype(cdt)
    sent_src = sent_embeds.astype(cdt)
    a = jnp.take(p4c_src, row_a, axis=0)        # (P_pad, ent_dim)
    b = jnp.take(p4c_src, row_b, axis=0)        # (P_pad, ent_dim)
    ctx = jnp.take(sent_src, row_ctx, axis=0)   # (P_pad, bert_dim)
    # TODO(synk): move this gather inside the kernel (PrefetchScalarGridSpec + in-kernel
    # row gather from a VMEM-resident pairs4class) to also drop this HBM round trip when
    # P >> b*e and pairs4class fits in VMEM.

    w1ab_c = w1ab.astype(cdt)
    w1c_c = w1c.astype(cdt)
    w2_c = w2p.astype(cdt)
    wc_c = wc.astype(cdt)

    row = lambda i: (i, 0)      # row-tiled arrays advance with the grid
    keep = lambda i: (0, 0)     # weights stay VMEM-resident across grid steps

    packed = pl.pallas_call(
        _make_rel_kernel(R, C, OUT, TM, approx_softmax),
        out_shape=jax.ShapeDtypeStruct((P_pad, OUT), odt),
        grid=(P_pad // TM,),
        in_specs=[
            pl.BlockSpec((TM, ent_dim), row),
            pl.BlockSpec((TM, ent_dim), row),
            pl.BlockSpec((TM, bert_dim), row),
            pl.BlockSpec((ent_dim, 2 * Hp), keep),
            pl.BlockSpec((bert_dim, Hp), keep),
            pl.BlockSpec((Hp, R), keep),
            pl.BlockSpec((R, C), keep),
            pl.BlockSpec((1, C), keep),
        ],
        out_specs=pl.BlockSpec((TM, OUT), row),
        compiler_params=pltpu.CompilerParams(
            dimension_semantics=("parallel",),     # shard row tiles across TCs (v7x)
            vmem_limit_bytes=32 * 1024 * 1024,     # safe on v5e/v6e/v7x scoped VMEM
        ),
    )(a, b, ctx, w1ab_c, w1c_c, w2_c, wc_c, bc2)

    # Split the packed slab; padded rows / tail lanes are simply dropped.
    rel_lr = packed[:P, 0:R]
    rel_rl = packed[:P, R:2 * R]
    probs_lr = packed[:P, 2 * R:2 * R + C]
    probs_rl = packed[:P, 2 * R + C:2 * (R + C)]
    return rel_lr, rel_rl, probs_lr, probs_rl


# ----------------------------- RELModel forward (predict path) -----------------------
def rel_model_forward(params_w, batch, sizes, *, use_bf16=False):
    """Reproduces RELModel.calculate / classification (predict=True, use_context=True,
    direction != 'l2r', compute_dem_loss=False)."""
    ent_types = batch["ent_types"]            # (b, e) int32, -1 = padding
    ent_embeds = batch["ent_embeds"]          # (b, e, 3*bert_dim)
    sent_embeds = batch["sentence_embeds"]    # (b, bert_dim)
    pairs_idx = batch["pairs_idx"]            # (3, P) int32

    # embedding_layer: map -1 -> padding_idx (= etype_size), then lookup.
    etype_size = sizes["etype_size"]
    ids = jnp.where(ent_types == -1, etype_size, ent_types)
    type_embeds = jnp.take(params_w["type_embed"], ids, axis=0)         # (b, e, etype_dim)

    # pair_representation: concat along feature dim.
    pairs4class = jnp.concatenate([ent_embeds, type_embeds], axis=2)    # (b, e, ent_dim)
    enttoks_type_embeds = pairs4class

    # get_pairs: flat row indices into pairs4class; the actual gather (into padded,
    # compute-dtype buffers) happens inside rel_pair_mlp, and the l2r vs r2l concat order
    # is handled inside the kernel by the split hidden_layer1 weights, so no (P, D_in)
    # feature matrix for either direction ever hits HBM.
    bsz, e, ent_dim = pairs4class.shape
    p4c_flat = pairs4class.reshape(bsz * e, ent_dim)
    i0, i1, i2 = pairs_idx[0], pairs_idx[1], pairs_idx[2]
    row_a = i0 * e + i1
    row_b = i0 * e + i2

    rel_lr, rel_rl, probs_lr, probs_rl = rel_pair_mlp(
        p4c_flat, sent_embeds, row_a, row_b, i0,
        params_w["w1"], params_w["w2"], params_w["wc"], params_w["bc"],
        use_bf16=use_bf16)

    return {
        "preds": (probs_lr, probs_rl),            # softmax(dim=1) probabilities
        "rel_embeds": rel_lr,
        "r2l_embeds": rel_rl,
        "enttoks_type_embeds": enttoks_type_embeds,
        "pairs_idx": pairs_idx,
        "pair4class": pairs4class,
    }


# ----------------------------- pure-JAX reference for verification -------------------
def reference_forward(params_w, batch, sizes):
    ids = jnp.where(batch["ent_types"] == -1, sizes["etype_size"], batch["ent_types"])
    type_embeds = jnp.take(params_w["type_embed"], ids, axis=0)
    pairs4class = jnp.concatenate([batch["ent_embeds"], type_embeds], axis=2)
    i0, i1, i2 = batch["pairs_idx"]
    a, b, ctx = pairs4class[i0, i1], pairs4class[i0, i2], batch["sentence_embeds"][i0]

    def mlp(x):
        h = _gelu(x @ params_w["w1"])
        r = _gelu(h @ params_w["w2"])
        logits = r @ params_w["wc"] + params_w["bc"]
        return r, jax.nn.softmax(logits, axis=1)

    r_lr, p_lr = mlp(jnp.concatenate([a, b, ctx], axis=-1))
    r_rl, p_rl = mlp(jnp.concatenate([b, a, ctx], axis=-1))
    return p_lr, p_rl, r_lr, r_rl


def _f32(x):
    return np.asarray(jnp.asarray(x, jnp.float32))


# ----------------------------- main ---------------------------------------------------
if __name__ == "__main__":
    # Small, forward-consistent sizes.
    b, seq, e = 2, 8, 6
    bert_dim, etype_dim = 32, 16
    hidden_dim, rel_reduced_size, rel_size = 64, 32, 8
    etype_size = 5
    P = 10
    ent_dim = bert_dim * 3 + etype_dim            # 112
    d_in = 2 * ent_dim + bert_dim                 # 256

    sizes = {"etype_size": etype_size, "rel_size": rel_size}

    key = jax.random.PRNGKey(0)
    ks = jax.random.split(key, 10)

    # Deterministic synthetic parameters (shapes follow RELModel.__init__).
    type_embed = jax.random.normal(ks[0], (etype_size + 1, etype_dim), jnp.float32) * 0.1
    type_embed = type_embed.at[etype_size].set(0.0)   # padding_idx row is zero
    params_w = {
        "type_embed": type_embed,
        "w1": jax.random.normal(ks[1], (d_in, hidden_dim), jnp.float32) * 0.05,              # hidden_layer1 (no bias)
        "w2": jax.random.normal(ks[2], (hidden_dim, rel_reduced_size), jnp.float32) * 0.05,  # hidden_layer2 (no bias)
        "wc": jax.random.normal(ks[3], (rel_reduced_size, rel_size), jnp.float32) * 0.05,    # l_class weight
        "bc": jax.random.normal(ks[4], (rel_size,), jnp.float32) * 0.05,                     # l_class bias
    }

    # Deterministic synthetic batch input.
    ent_types = jax.random.randint(ks[5], (b, e), -1, etype_size).astype(jnp.int32)
    batch = {
        "embeddings": jax.random.normal(ks[6], (b, seq, bert_dim), jnp.float32),   # only shape is used
        "ent_types": ent_types,
        "ent_embeds": jax.random.normal(ks[7], (b, e, 3 * bert_dim), jnp.float32),
        "sentence_embeds": jax.random.normal(ks[8], (b, bert_dim), jnp.float32),
        "pairs_idx": jnp.stack([
            jax.random.randint(ks[9], (P,), 0, b),
            jnp.arange(P, dtype=jnp.int32) % e,
            (jnp.arange(P, dtype=jnp.int32) + 1) % e,
        ]).astype(jnp.int32),
    }

    # f32 path (tight check against the pure-JAX reference; exact reciprocal in softmax).
    out = rel_model_forward(params_w, batch, sizes)
    jax.block_until_ready(out)

    p_lr_ref, p_rl_ref, r_lr_ref, r_rl_ref = reference_forward(params_w, batch, sizes)
    np.testing.assert_allclose(_f32(out["preds"][0]), _f32(p_lr_ref), rtol=1e-4, atol=1e-4)
    np.testing.assert_allclose(_f32(out["preds"][1]), _f32(p_rl_ref), rtol=1e-4, atol=1e-4)
    np.testing.assert_allclose(_f32(out["rel_embeds"]), _f32(r_lr_ref), rtol=1e-4, atol=1e-4)
    np.testing.assert_allclose(_f32(out["r2l_embeds"]), _f32(r_rl_ref), rtol=1e-4, atol=1e-4)

    # bf16 MXU fast path (all generations; f32 accumulation + f32 gelu/softmax epilogue,
    # approx EUP reciprocal, bf16 packed output).  Loose check vs the f32 reference.
    out_bf16 = rel_model_forward(params_w, batch, sizes, use_bf16=True)
    jax.block_until_ready(out_bf16)
    np.testing.assert_allclose(_f32(out_bf16["preds"][0]), _f32(p_lr_ref), rtol=5e-2, atol=5e-2)
    np.testing.assert_allclose(_f32(out_bf16["preds"][1]), _f32(p_rl_ref), rtol=5e-2, atol=5e-2)
    np.testing.assert_allclose(_f32(out_bf16["rel_embeds"]), _f32(r_lr_ref), rtol=5e-2, atol=5e-2)
    np.testing.assert_allclose(_f32(out_bf16["r2l_embeds"]), _f32(r_rl_ref), rtol=5e-2, atol=5e-2)

    # TODO(synk): training-only branches (CrossEntropyLoss, create_target_features,
    # balance_dataset, compute_metrics, calc_stats) are host-side / data-dependent Python
    # and are not part of the TPU compute path.

    print("KERNEL_OK")
</pallas_src>

<mosaic_0001>
module attributes {stable_mosaic.version = 11 : i64} {
  func.func @kernel(%arg0: i32, %arg1: memref<16x112xf32, #tpu.memory_space<vmem>>, %arg2: memref<16x112xf32, #tpu.memory_space<vmem>>, %arg3: memref<16x32xf32, #tpu.memory_space<vmem>>, %arg4: memref<112x256xf32, #tpu.memory_space<vmem>>, %arg5: memref<32x128xf32, #tpu.memory_space<vmem>>, %arg6: memref<128x32xf32, #tpu.memory_space<vmem>>, %arg7: memref<32x8xf32, #tpu.memory_space<vmem>>, %arg8: memref<1x8xf32, #tpu.memory_space<vmem>>, %arg9: memref<16x128xf32, #tpu.memory_space<vmem>>) attributes {dimension_semantics = [#tpu.dimension_semantics<parallel>], iteration_bounds = array<i64: 1>, scalar_prefetch = 0 : i64, scratch_operands = 0 : i64, tpu.core_type = #tpu.core_type<tc>, window_params = [{transform_indices = @transform_0, window_bounds = array<i64: 16, 112>}, {transform_indices = @transform_1, window_bounds = array<i64: 16, 112>}, {transform_indices = @transform_2, window_bounds = array<i64: 16, 32>}, {pipeline_mode = #tpu.pipeline_mode<synchronous>, transform_indices = @transform_3, window_bounds = array<i64: 112, 256>}, {pipeline_mode = #tpu.pipeline_mode<synchronous>, transform_indices = @transform_4, window_bounds = array<i64: 32, 128>}, {pipeline_mode = #tpu.pipeline_mode<synchronous>, transform_indices = @transform_5, window_bounds = array<i64: 128, 32>}, {pipeline_mode = #tpu.pipeline_mode<synchronous>, transform_indices = @transform_6, window_bounds = array<i64: 32, 8>}, {pipeline_mode = #tpu.pipeline_mode<synchronous>, transform_indices = @transform_7, window_bounds = array<i64: 1, 8>}, {transform_indices = @transform_8, window_bounds = array<i64: 16, 128>}]} {
    %c0 = arith.constant 0 : index
    %c0_0 = arith.constant 0 : index
    %0 = vector.load %arg1[%c0, %c0_0] : memref<16x112xf32, #tpu.memory_space<vmem>>, vector<16x112xf32>
    %c0_1 = arith.constant 0 : index
    %c0_2 = arith.constant 0 : index
    %1 = vector.load %arg2[%c0_1, %c0_2] : memref<16x112xf32, #tpu.memory_space<vmem>>, vector<16x112xf32>
    %c0_3 = arith.constant 0 : index
    %c0_4 = arith.constant 0 : index
    %2 = vector.load %arg3[%c0_3, %c0_4] : memref<16x32xf32, #tpu.memory_space<vmem>>, vector<16x32xf32>
    %c0_5 = arith.constant 0 : index
    %c0_6 = arith.constant 0 : index
    %3 = vector.load %arg4[%c0_5, %c0_6] : memref<112x256xf32, #tpu.memory_space<vmem>>, vector<112x256xf32>
    %cst = arith.constant dense<0.000000e+00> : vector<16x256xf32>
    %4 = tpu.matmul %0, %3, %cst {dimension_numbers = #tpu.dot_dimension_numbers<[1], [0], [0], [1], [0, 0, 1, 1], [], []>} : vector<16x112xf32>, vector<112x256xf32>, vector<16x256xf32> -> vector<16x256xf32>
    %c0_7 = arith.constant 0 : index
    %c0_8 = arith.constant 0 : index
    %5 = vector.load %arg4[%c0_7, %c0_8] : memref<112x256xf32, #tpu.memory_space<vmem>>, vector<112x256xf32>
    %cst_9 = arith.constant dense<0.000000e+00> : vector<16x256xf32>
    %6 = tpu.matmul %1, %5, %cst_9 {dimension_numbers = #tpu.dot_dimension_numbers<[1], [0], [0], [1], [0, 0, 1, 1], [], []>} : vector<16x112xf32>, vector<112x256xf32>, vector<16x256xf32> -> vector<16x256xf32>
    %c0_10 = arith.constant 0 : index
    %c0_11 = arith.constant 0 : index
    %7 = vector.load %arg5[%c0_10, %c0_11] : memref<32x128xf32, #tpu.memory_space<vmem>>, vector<32x128xf32>
    %cst_12 = arith.constant dense<0.000000e+00> : vector<16x128xf32>
    %8 = tpu.matmul %2, %7, %cst_12 {dimension_numbers = #tpu.dot_dimension_numbers<[1], [0], [0], [1], [0, 0, 1, 1], [], []>} : vector<16x32xf32>, vector<32x128xf32>, vector<16x128xf32> -> vector<16x128xf32>
    %9 = vector.extract_strided_slice %4 {offsets = [0, 0], sizes = [16, 128], strides = [1, 1]} : vector<16x256xf32> to vector<16x128xf32>
    %10 = vector.extract_strided_slice %6 {offsets = [0, 128], sizes = [16, 128], strides = [1, 1]} : vector<16x256xf32> to vector<16x128xf32>
    %11 = arith.addf %9, %10 : vector<16x128xf32>
    %12 = arith.addf %11, %8 : vector<16x128xf32>
    %13 = vector.extract_strided_slice %6 {offsets = [0, 0], sizes = [16, 128], strides = [1, 1]} : vector<16x256xf32> to vector<16x128xf32>
    %14 = vector.extract_strided_slice %4 {offsets = [0, 128], sizes = [16, 128], strides = [1, 1]} : vector<16x256xf32> to vector<16x128xf32>
    %15 = arith.addf %13, %14 : vector<16x128xf32>
    %16 = arith.addf %15, %8 : vector<16x128xf32>
    %17 = tpu.concatenate %12, %16 in 0 : vector<16x128xf32>, vector<16x128xf32> -> vector<32x128xf32>
    %18 = arith.mulf %17, %17 : vector<32x128xf32>
    %cst_13 = arith.constant 5.000000e-01 : f32
    %19 = vector.broadcast %cst_13 : f32 to vector<32x128xf32>
    %20 = arith.mulf %19, %17 : vector<32x128xf32>
    %cst_14 = arith.constant 4.471500e-02 : f32
    %21 = vector.broadcast %cst_14 : f32 to vector<32x128xf32>
    %22 = arith.mulf %21, %18 : vector<32x128xf32>
    %cst_15 = arith.constant 1.000000e+00 : f32
    %23 = vector.broadcast %cst_15 : f32 to vector<32x128xf32>
    %24 = arith.addf %23, %22 : vector<32x128xf32>
    %25 = arith.mulf %17, %24 : vector<32x128xf32>
    %cst_16 = arith.constant 1.25331414 : f32
    %26 = vector.broadcast %cst_16 : f32 to vector<32x128xf32>
    %27 = arith.mulf %26, %25 : vector<32x128xf32>
    %28 = math.tanh %27 : vector<32x128xf32>
    %cst_17 = arith.constant 1.000000e+00 : f32
    %29 = vector.broadcast %cst_17 : f32 to vector<32x128xf32>
    %30 = arith.addf %29, %28 : vector<32x128xf32>
    %31 = arith.mulf %20, %30 : vector<32x128xf32>
    %c0_18 = arith.constant 0 : index
    %c0_19 = arith.constant 0 : index
    %32 = vector.load %arg6[%c0_18, %c0_19] : memref<128x32xf32, #tpu.memory_space<vmem>>, vector<128x32xf32>
    %cst_20 = arith.constant dense<0.000000e+00> : vector<32x32xf32>
    %33 = tpu.matmul %31, %32, %cst_20 {dimension_numbers = #tpu.dot_dimension_numbers<[1], [0], [0], [1], [0, 0, 1, 1], [], []>} : vector<32x128xf32>, vector<128x32xf32>, vector<32x32xf32> -> vector<32x32xf32>
    %34 = arith.mulf %33, %33 : vector<32x32xf32>
    %cst_21 = arith.constant 5.000000e-01 : f32
    %35 = vector.broadcast %cst_21 : f32 to vector<32x32xf32>
    %36 = arith.mulf %35, %33 : vector<32x32xf32>
    %cst_22 = arith.constant 4.471500e-02 : f32
    %37 = vector.broadcast %cst_22 : f32 to vector<32x32xf32>
    %38 = arith.mulf %37, %34 : vector<32x32xf32>
    %cst_23 = arith.constant 1.000000e+00 : f32
    %39 = vector.broadcast %cst_23 : f32 to vector<32x32xf32>
    %40 = arith.addf %39, %38 : vector<32x32xf32>
    %41 = arith.mulf %33, %40 : vector<32x32xf32>
    %cst_24 = arith.constant 1.25331414 : f32
    %42 = vector.broadcast %cst_24 : f32 to vector<32x32xf32>
    %43 = arith.mulf %42, %41 : vector<32x32xf32>
    %44 = math.tanh %43 : vector<32x32xf32>
    %cst_25 = arith.constant 1.000000e+00 : f32
    %45 = vector.broadcast %cst_25 : f32 to vector<32x32xf32>
    %46 = arith.addf %45, %44 : vector<32x32xf32>
    %47 = arith.mulf %36, %46 : vector<32x32xf32>
    %c0_26 = arith.constant 0 : index
    %c0_27 = arith.constant 0 : index
    %48 = vector.load %arg7[%c0_26, %c0_27] : memref<32x8xf32, #tpu.memory_space<vmem>>, vector<32x8xf32>
    %cst_28 = arith.constant dense<0.000000e+00> : vector<32x8xf32>
    %49 = tpu.matmul %47, %48, %cst_28 {dimension_numbers = #tpu.dot_dimension_numbers<[1], [0], [0], [1], [0, 0, 1, 1], [], []>} : vector<32x32xf32>, vector<32x8xf32>, vector<32x8xf32> -> vector<32x8xf32>
    %c0_29 = arith.constant 0 : index
    %c0_30 = arith.constant 0 : index
    %50 = vector.load %arg8[%c0_29, %c0_30] : memref<1x8xf32, #tpu.memory_space<vmem>>, vector<1x8xf32>
    %51 = vector.broadcast %50 : vector<1x8xf32> to vector<32x8xf32>
    %52 = arith.addf %49, %51 : vector<32x8xf32>
    %cst_31 = arith.constant dense<0xFF800000> : vector<32xf32>
    %53 = vector.multi_reduction <maximumf>, %52, %cst_31 [1] : vector<32x8xf32> to vector<32xf32>
    %54 = vector.shape_cast %53 : vector<32xf32> to vector<32x1xf32>
    %55 = vector.broadcast %54 : vector<32x1xf32> to vector<32x8xf32>
    %56 = arith.subf %52, %55 : vector<32x8xf32>
    %57 = math.exp %56 : vector<32x8xf32>
    %cst_32 = arith.constant dense<0.000000e+00> : vector<32xf32>
    %58 = vector.multi_reduction <add>, %57, %cst_32 [1] : vector<32x8xf32> to vector<32xf32>
    %59 = vector.shape_cast %58 : vector<32xf32> to vector<32x1xf32>
    %60 = tpu.reciprocal %59 : vector<32x1xf32> -> vector<32x1xf32>
    %61 = vector.broadcast %60 : vector<32x1xf32> to vector<32x8xf32>
    %62 = arith.mulf %57, %61 : vector<32x8xf32>
    %63 = vector.extract_strided_slice %47 {offsets = [0, 0], sizes = [16, 32], strides = [1, 1]} : vector<32x32xf32> to vector<16x32xf32>
    %c0_33 = arith.constant 0 : index
    %c0_34 = arith.constant 0 : index
    %64 = vector.load %arg9[%c0_33, %c0_34] : memref<16x128xf32, #tpu.memory_space<vmem>>, vector<16x32xf32>
    tpu.vector_store %arg9[%c0_33, %c0_34], %63 {strides = array<i32>} : memref<16x128xf32, #tpu.memory_space<vmem>>, vector<16x32xf32>,
    %65 = vector.extract_strided_slice %47 {offsets = [16, 0], sizes = [16, 32], strides = [1, 1]} : vector<32x32xf32> to vector<16x32xf32>
    %c0_35 = arith.constant 0 : index
    %c32 = arith.constant 32 : index
    %66 = vector.load %arg9[%c0_35, %c32] : memref<16x128xf32, #tpu.memory_space<vmem>>, vector<16x32xf32>
    tpu.vector_store %arg9[%c0_35, %c32], %65 {strides = array<i32>} : memref<16x128xf32, #tpu.memory_space<vmem>>, vector<16x32xf32>,
    %67 = vector.extract_strided_slice %62 {offsets = [0, 0], sizes = [16, 8], strides = [1, 1]} : vector<32x8xf32> to vector<16x8xf32>
    %c0_36 = arith.constant 0 : index
    %c64 = arith.constant 64 : index
    %68 = vector.load %arg9[%c0_36, %c64] : memref<16x128xf32, #tpu.memory_space<vmem>>, vector<16x8xf32>
    tpu.vector_store %arg9[%c0_36, %c64], %67 {strides = array<i32>} : memref<16x128xf32, #tpu.memory_space<vmem>>, vector<16x8xf32>,
    %69 = vector.extract_strided_slice %62 {offsets = [16, 0], sizes = [16, 8], strides = [1, 1]} : vector<32x8xf32> to vector<16x8xf32>
    %c0_37 = arith.constant 0 : index
    %c72 = arith.constant 72 : index
    %70 = vector.load %arg9[%c0_37, %c72] : memref<16x128xf32, #tpu.memory_space<vmem>>, vector<16x8xf32>
    tpu.vector_store %arg9[%c0_37, %c72], %69 {strides = array<i32>} : memref<16x128xf32, #tpu.memory_space<vmem>>, vector<16x8xf32>,
    %cst_38 = arith.constant 0.000000e+00 : f32
    %71 = vector.broadcast %cst_38 : f32 to vector<16x48xf32>
    %c0_39 = arith.constant 0 : index
    %c80 = arith.constant 80 : index
    %72 = vector.load %arg9[%c0_39, %c80] : memref<16x128xf32, #tpu.memory_space<vmem>>, vector<16x48xf32>
    tpu.vector_store %arg9[%c0_39, %c80], %71 {strides = array<i32>} : memref<16x128xf32, #tpu.memory_space<vmem>>, vector<16x48xf32>,
    return
  }
  func.func @transform_0(%arg0: i32) -> (i32, i32) {
    %c0_i32 = arith.constant 0 : i32
    %c0_i32_0 = arith.constant 0 : i32
    return %arg0, %c0_i32 : i32, i32
  }
  func.func @transform_1(%arg0: i32) -> (i32, i32) {
    %c0_i32 = arith.constant 0 : i32
    %c0_i32_0 = arith.constant 0 : i32
    return %arg0, %c0_i32 : i32, i32
  }
  func.func @transform_2(%arg0: i32) -> (i32, i32) {
    %c0_i32 = arith.constant 0 : i32
    %c0_i32_0 = arith.constant 0 : i32
    return %arg0, %c0_i32 : i32, i32
  }
  func.func @transform_3(%arg0: i32) -> (i32, i32) {
    %c0_i32 = arith.constant 0 : i32
    %c0_i32_0 = arith.constant 0 : i32
    %c0_i32_1 = arith.constant 0 : i32
    return %c0_i32, %c0_i32_0 : i32, i32
  }
  func.func @transform_4(%arg0: i32) -> (i32, i32) {
    %c0_i32 = arith.constant 0 : i32
    %c0_i32_0 = arith.constant 0 : i32
    %c0_i32_1 = arith.constant 0 : i32
    return %c0_i32, %c0_i32_0 : i32, i32
  }
  func.func @transform_5(%arg0: i32) -> (i32, i32) {
    %c0_i32 = arith.constant 0 : i32
    %c0_i32_0 = arith.constant 0 : i32
    %c0_i32_1 = arith.constant 0 : i32
    return %c0_i32, %c0_i32_0 : i32, i32
  }
  func.func @transform_6(%arg0: i32) -> (i32, i32) {
    %c0_i32 = arith.constant 0 : i32
    %c0_i32_0 = arith.constant 0 : i32
    %c0_i32_1 = arith.constant 0 : i32
    return %c0_i32, %c0_i32_0 : i32, i32
  }
  func.func @transform_7(%arg0: i32) -> (i32, i32) {
    %c0_i32 = arith.constant 0 : i32
    %c0_i32_0 = arith.constant 0 : i32
    %c0_i32_1 = arith.constant 0 : i32
    return %c0_i32, %c0_i32_0 : i32, i32
  }
  func.func @transform_8(%arg0: i32) -> (i32, i32) {
    %c0_i32 = arith.constant 0 : i32
    %c0_i32_0 = arith.constant 0 : i32
    return %arg0, %c0_i32 : i32, i32
  }
}

</mosaic_0001>

<bundles_post_ra>
// kernel: tpu_custom_call.1
= control target key start
LH: loop header
LB: loop body
LE: loop exit
PB: predicated region body
PF: predicated region fallthrough
CT: control target
= control target key end

     0   :  { %13 = vsyncpa [#allocation3], 0  ;;  %s882_s0 = inlined_call_operand.vmem [shape: f32[16,112], index: 0, kind: input, shape index: {}]   ;;  %s883_s1 = inlined_call_operand.vmem [shape: f32[16,112], index: 1, kind: input, shape index: {}]   ;;  %s884_s2 = inlined_call_operand.vmem [shape: f32[16,32], index: 2, kind: input, shape index: {}]   ;;  %s885_s3 = inlined_call_operand.hbm [shape: f32[112,256], index: 3, kind: input, shape index: {}]   ;;  %s886_s4 = inlined_call_operand.vmem [shape: f32[32,128], index: 4, kind: input, shape index: {}]   ;;  %s887_s5 = inlined_call_operand.vmem [shape: f32[128,32], index: 5, kind: input, shape index: {}]   ;;  %s888_s6 = inlined_call_operand.vmem [shape: f32[32,8], index: 6, kind: input, shape index: {}]   ;;  %s889_s7 = inlined_call_operand.vmem [shape: f32[1,8], index: 7, kind: input, shape index: {}]   ;;  %s890_s8 = inlined_call_operand.hbm [shape: f32[16,128], index: 8, kind: output, shape index: {}]  }
   0x1   :  { %14 = vsyncpa [#allocation4], 0  ;;  %s25_s29 = sshll.u32 %s885_s3, 4  ;;  %s658_s30 = smov [#allocation2]   ;;  %s26_s29 = int_to_ptr.hbm [resolvable:$true] %s25_s29 }
   0x2   :  { %s27_s9 = sshll.u32 %s658_s30, 4  ;;  %s659_s10 = smov 256   ;;  %s28_s9 = int_to_ptr.vmem [resolvable:$true] %s27_s9 }
   0x3   :  { %s660_s11 = smov 16  }
   0x4   :  { %33 = dma.hbm_to_vmem [thread:$0]  %s26_s29, 3584, %s28_s9, [#allocation3], %s659_s10, %s659_s10, %s660_s11  }
   0x5   :  { %654 = dma.done.wait [#allocation3], 3584  }
   0x6   :  { %655 = vsyncadd [#allocation3], 4294963712  ;;  %v78_v0 = vld [vmem:[#allocation2 + $0xd0] sm:$0xff]  ;;  %v716_v1 = vld [vmem:[#allocation2 + $0xd8] sm:$0xff]  ;;  %vm80_vm0 = vcmask 916480   ;;  %vm189_vm1 = vcmask 261120  }
   0x7   :  { %v76_v2 = vld [vmem:[#allocation2 + $0xc0] sm:$0xff]  ;;  %89 = vmatpush.msra.mxu0 %v78_v0  ;;  %112 = vmatpush.msra.mxu3 %v716_v1  ;;  %v719_v3 = vld [vmem:[#allocation2 + $0xc8] sm:$0xff]  ;;  %v74_v4 = vld [vmem:[#allocation2 + $0xb0] sm:$0xff]  ;;  %vm393_vm2 = vcmask 64512   ;;  %s662_s17 = smov 64   ;;  %vm498_vm7 = vcmask 523520  }
   0x8   :  { %v721_v5 = vld [vmem:[#allocation2 + $0xb8] sm:$0xff]  ;;  %141 = vmatpush.msra.mxu2 %v78_v0  ;;  %v72_v6 = vld [vmem:[#allocation2 + $0xa0] sm:$0xff]  ;;  %v724_v7 = vld [vmem:[#allocation2 + $0xa8] sm:$0xff]  ;;  %s663_s18 = smov 72   ;;  %s665_s19 = smov [#allocation5]  }
   0x9   :  { %90 = vmatpush.msra.mxu0 %v76_v2  ;;  %113 = vmatpush.msra.mxu3 %v719_v3  ;;  %v70_v8 = vld [vmem:[#allocation2 + $0x90] sm:$0xff]  ;;  %v727_v9 = vld [vmem:[#allocation2 + $0x98] sm:$0xff]  ;;  %v68_v10 = vld [vmem:[#allocation2 + $0x80] sm:$0xff]  ;;  %s530_s20 = sshll.u32 %s665_s19, 4  ;;  %s532_s23 = sshll.u32 %s890_s8, 4  ;;  %s531_s20 = int_to_ptr.vmem [resolvable:$true] %s530_s20  ;;  %s533_s23 = int_to_ptr.hbm [resolvable:$true] %s532_s23 }
   0xa   :  { %142 = vmatpush.msra.mxu2 %v76_v2  ;;  %v730_v11 = vld [vmem:[#allocation2 + $0x88] sm:$0xff]  ;;  %v66_v12 = vld [vmem:[#allocation2 + $0x70] sm:$0xff]  ;;  %v733_v13 = vld [vmem:[#allocation2 + $0x78] sm:$0xff]  ;;  %s666_s24 = smov 128   ;;  %s667_s25 = smov 8  }
   0xb   :  { %91 = vmatpush.msra.mxu0 %v74_v4  ;;  %114 = vmatpush.msra.mxu3 %v721_v5  ;;  %v64_v14 = vld [vmem:[#allocation2 + $0x60] sm:$0xff]  ;;  %v736_v15 = vld [vmem:[#allocation2 + $0x68] sm:$0xff]  ;;  %v62_v16 = vld [vmem:[#allocation2 + $0x50] sm:$0xff] }
   0xc   :  { %143 = vmatpush.msra.mxu2 %v74_v4  ;;  %v63_v17 = vld [vmem:[#allocation2 + $0x58] sm:$0xff]  ;;  %v60_v18 = vld [vmem:[#allocation2 + $0x40] sm:$0xff]  ;;  %v61_v19 = vld [vmem:[#allocation2 + $0x48] sm:$0xff] }
   0xd   :  { %92 = vmatpush.msra.mxu0 %v72_v6  ;;  %115 = vmatpush.msra.mxu3 %v724_v7  ;;  %v58_v20 = vld [vmem:[#allocation2 + $0x30] sm:$0xff]  ;;  %v59_v21 = vld [vmem:[#allocation2 + $0x38] sm:$0xff]  ;;  %v56_v22 = vld [vmem:[#allocation2 + $0x20] sm:$0xff] }
   0xe   :  { %144 = vmatpush.msra.mxu2 %v72_v6  ;;  %v57_v23 = vld [vmem:[#allocation2 + $0x28] sm:$0xff]  ;;  %v54_v24 = vld [vmem:[#allocation2 + $0x10] sm:$0xff]  ;;  %v55_v25 = vld [vmem:[#allocation2 + $0x18] sm:$0xff] }
   0xf   :  { %93 = vmatpush.msra.mxu0 %v70_v8  ;;  %116 = vmatpush.msra.mxu3 %v727_v9  ;;  %v52_v26 = vld [vmem:[#allocation2] sm:$0xff]  ;;  %v53_v27 = vld [vmem:[#allocation2 + $0x8] sm:$0xff]  ;;  %v188_v30 = vld [vmem:[%s886_s4 + $0x18] sm:$0xff] }
  0x10   :  { %145 = vmatpush.msra.mxu2 %v70_v8  ;;  %v46_v28 = vld [vmem:[%s882_s0] sm:$0xff]  ;;  %v187_v31 = vld [vmem:[%s886_s4 + $0x10] sm:$0xff]  ;;  %v186_v32 = vld [vmem:[%s886_s4 + $0x8] sm:$0xff] }
  0x11   :  { %94 = vmatpush.msra.mxu0 %v68_v10  ;;  %117 = vmatpush.msra.mxu3 %v730_v11  ;;  %v48_v29 = vld [vmem:[%s883_s1] sm:$0xff]  ;;  %v47_v33 = vld [vmem:[%s882_s0 + $0x8] sm:$0xff]  ;;  %v278_v38 = vld [vmem:[%s887_s5 + $0x78] sm:$0xff] }
  0x12   :  { %146 = vmatpush.msra.mxu2 %v68_v10  ;;  %v185_v34 = vld [vmem:[%s886_s4] sm:$0xff]  ;;  %v49_v35 = vld [vmem:[%s883_s1 + $0x8] sm:$0xff]  ;;  %279 = vmatpush.msra.mxu1 %v278_v38  ;;  %v277_v39 = vld [vmem:[%s887_s5 + $0x70] sm:$0xff] }
  0x13   :  { %95 = vmatpush.msra.mxu0 %v66_v12  ;;  %118 = vmatpush.msra.mxu3 %v733_v13  ;;  %v50_v36 = vld [vmem:[%s884_s2] sm:$0xff]  ;;  %v51_v37 = vld [vmem:[%s884_s2 + $0x8] sm:$0xff]  ;;  %v274_v42 = vld [vmem:[%s887_s5 + $0x58] sm:$0xff] }
  0x14   :  { %147 = vmatpush.msra.mxu2 %v66_v12  ;;  %280 = vmatpush.msra.mxu1 %v277_v39  ;;  %v276_v40 = vld [vmem:[%s887_s5 + $0x68] sm:$0xff]  ;;  %v275_v41 = vld [vmem:[%s887_s5 + $0x60] sm:$0xff]  ;;  %v273_v43 = vld [vmem:[%s887_s5 + $0x50] sm:$0xff] }
  0x15   :  { %96 = vmatpush.msra.mxu0 %v64_v14  ;;  %119 = vmatpush.msra.mxu3 %v736_v15  ;;  %v272_v44 = vld [vmem:[%s887_s5 + $0x48] sm:$0xff]  ;;  %v271_v45 = vld [vmem:[%s887_s5 + $0x40] sm:$0xff]  ;;  %v270_v47 = vld [vmem:[%s887_s5 + $0x38] sm:$0xff] }
  0x16   :  { %148 = vmatpush.msra.mxu2 %v64_v14  ;;  %281 = vmatpush.msra.mxu1 %v276_v40  ;;  %v269_v48 = vld [vmem:[%s887_s5 + $0x30] sm:$0xff]  ;;  %v268_v50 = vld [vmem:[%s887_s5 + $0x28] sm:$0xff]  ;;  %v267_v51 = vld [vmem:[%s887_s5 + $0x20] sm:$0xff] }
  0x17   :  { %97 = vmatpush.msra.mxu0 %v62_v16  ;;  %120 = vmatpush.msra.mxu3 %v63_v17  ;;  %v266_v52 = vld [vmem:[%s887_s5 + $0x18] sm:$0xff]  ;;  %v265_v53 = vld [vmem:[%s887_s5 + $0x10] sm:$0xff]  ;;  %v264_v55 = vld [vmem:[%s887_s5 + $0x8] sm:$0xff] }
  0x18   :  { %149 = vmatpush.msra.mxu2 %v62_v16  ;;  %282 = vmatpush.msra.mxu1 %v275_v41  ;;  %v263_v56 = vld [vmem:[%s887_s5] sm:$0xff] }
  0x19   :  { %98 = vmatpush.msra.mxu0 %v60_v18  ;;  %121 = vmatpush.msra.mxu3 %v61_v19 }
  0x1a   :  { %150 = vmatpush.msra.mxu2 %v60_v18  ;;  %283 = vmatpush.msra.mxu1 %v274_v42 }
  0x1b   :  { %99 = vmatpush.msra.mxu0 %v58_v20  ;;  %122 = vmatpush.msra.mxu3 %v59_v21 }
  0x1c   :  { %151 = vmatpush.msra.mxu2 %v58_v20  ;;  %284 = vmatpush.msra.mxu1 %v273_v43 }
  0x1d   :  { %100 = vmatpush.msra.mxu0 %v56_v22  ;;  %123 = vmatpush.msra.mxu3 %v57_v23 }
  0x1e   :  { %152 = vmatpush.msra.mxu2 %v56_v22  ;;  %285 = vmatpush.msra.mxu1 %v272_v44  ;;  %v347_v44 = vld [vmem:[%s888_s6 + $0x18] sm:$0xff] }
  0x1f   :  { %101 = vmatpush.msra.mxu0 %v54_v24  ;;  %124 = vmatpush.msra.mxu3 %v55_v25 }
  0x20   :  { %153 = vmatpush.msra.mxu2 %v54_v24  ;;  %286 = vmatpush.msra.mxu1 %v271_v45  ;;  %v346_v45 = vld [vmem:[%s888_s6 + $0x10] sm:$0xff] }
  0x21   :  { %102 = vmatpush.msra.mxu0 %v52_v26  ;;  %125 = vmatpush.msra.mxu3 %v53_v27 }
  0x22   :  { %545 = vmatmul.msk.f32.vlgmr.msra.gmra.mxu0 %vm80_vm0, %v46_v28  ;;  %154 = vmatpush.msra.mxu2 %v52_v26 }
  0x23   :  { %164 = vmatpush.msrb.mxu3 %v716_v1  ;;  %549 = vmatmul.msk.f32.vlgmr.msra.gmra.mxu2 %vm80_vm0, %v48_v29 }
  0x24   :  { %547 = vmatmul.msk.f32.vlgmr.msra.gmra.mxu3 %vm80_vm0, %v46_v28  ;;  %208 = vmatpush.msrb.mxu0 %v188_v30 }
  0x25   :  { %165 = vmatpush.msrb.mxu3 %v719_v3  ;;  %287 = vmatpush.msra.mxu1 %v270_v47  ;;  %v344_v47 = vld [vmem:[%s888_s6] sm:$0xff] }
  0x26   :  { %209 = vmatpush.msrb.mxu0 %v187_v31  ;;  %559 = vmatpush.msrb.mxu2 %v347_v44 }
  0x27   :  { %166 = vmatpush.msrb.mxu3 %v721_v5  ;;  %288 = vmatpush.msra.mxu1 %v269_v48 }
  0x28   :  { %210 = vmatpush.msrb.mxu0 %v186_v32  ;;  %560 = vmatpush.msrb.mxu2 %v346_v45 }
  0x29   :  { %167 = vmatpush.msrb.mxu3 %v724_v7  ;;  %289 = vmatpush.msra.mxu1 %v268_v50 }
  0x2a   :  { %546 = vmatmul.msk.f32.gmra.mxu0 %vm80_vm0, %v47_v33 }
  0x2b   :  { %168 = vmatpush.msrb.mxu3 %v727_v9  ;;  %211 = vmatpush.msrb.mxu0 %v185_v34 }
  0x2c   :  { %548 = vmatmul.msk.f32.gmra.mxu3 %vm80_vm0, %v47_v33  ;;  %550 = vmatmul.msk.f32.gmra.mxu2 %vm80_vm0, %v49_v35 }
  0x2d   :  { %169 = vmatpush.msrb.mxu3 %v730_v11  ;;  %290 = vmatpush.msra.mxu1 %v267_v51 }
  0x2e   :  { %376 = vmatpush.msra.mxu0 %v347_v44 }
  0x2f   :  { %170 = vmatpush.msrb.mxu3 %v733_v13  ;;  %291 = vmatpush.msra.mxu1 %v266_v52 }
  0x30   :  { %377 = vmatpush.msra.mxu0 %v346_v45 }
  0x31   :  { %171 = vmatpush.msrb.mxu3 %v736_v15  ;;  %292 = vmatpush.msra.mxu1 %v265_v53 }
  0x32   :  { %553 = vmatmul.msk.f32.vlgmr.msrb.gmra.mxu0 %vm189_vm1, %v50_v36 }
  0x33   :  { %172 = vmatpush.msrb.mxu3 %v63_v17  ;;  %293 = vmatpush.msra.mxu1 %v264_v55 }
  0x35   :  { %173 = vmatpush.msrb.mxu3 %v61_v19  ;;  %294 = vmatpush.msra.mxu1 %v263_v56 }
  0x37   :  { %174 = vmatpush.msrb.mxu3 %v59_v21 }
  0x39   :  { %175 = vmatpush.msrb.mxu3 %v57_v23 }
  0x3a   :  { %554 = vmatmul.msk.f32.gmra.mxu0 %vm189_vm1, %v51_v37 }
  0x3b   :  { %176 = vmatpush.msrb.mxu3 %v55_v25 }
  0x3d   :  { %177 = vmatpush.msrb.mxu3 %v53_v27 }
  0x3e   :  { %551 = vmatmul.msk.f32.vlgmr.msrb.gmra.mxu3 %vm80_vm0, %v48_v29 }
  0x46   :  { %552 = vmatmul.msk.f32.gmra.mxu3 %vm80_vm0, %v49_v35 }
  0x9f   :  { %v104_v46 = vpop.f32.mrf.mxu0 }
  0xa6   :  { %v156_v58 = vpop.f32.mrf.mxu2 }
  0xa7   :  { %v127_v49 = vpop.f32.mrf.mxu3  ;;  %v107_v54 = vpop.f32.mrf.mxu0 }
  0xa8   :  { %v223_v60 = vadd.f32 %v156_v58, %v127_v49 }
  0xaf   :  { %v130_v57 = vpop.f32.mrf.mxu3  ;;  %v213_v59 = vpop.f32.mrf.mxu0 }
  0xb0   :  { %v225_v63 = vadd.f32 %v223_v60, %v213_v59  ;;  %v159_v1 = vpop.f32.mrf.mxu2 }
  0xb1   :  { %v224_v4 = vadd.f32 %v159_v1, %v130_v57 }
  0xb2   :  { %v229_v3 = vmul.f32 %v225_v63, %v225_v63  ;;  %v233_v38 = vmul.f32 0.5, %v225_v63 }
  0xb4   :  { %v237_v10 = vmul.f32 0.044715, %v229_v3 }
  0xb6   :  { %v241_v16 = vadd.f32 1.0, %v237_v10 }
  0xb7   :  { %v216_v6 = vpop.f32.mrf.mxu0 }
  0xb8   :  { %v226_v11 = vadd.f32 %v224_v4, %v216_v6  ;;  %v245_v22 = vmul.f32 %v241_v16, %v225_v63 }
  0xba   :  { %v230_v17 = vmul.f32 %v226_v11, %v226_v11  ;;  %v249_v28 = vmul.f32 1.2533141, %v245_v22  ;;  %v234_v42 = vmul.f32 0.5, %v226_v11 }
  0xbc   :  { %v238_v20 = vmul.f32 0.044715, %v230_v17 }
  0xbe   :  { %v242_v27 = vadd.f32 1.0, %v238_v20 }
  0xc0   :  { %v246_v30 = vmul.f32 %v242_v27, %v226_v11 }
  0xc1   :  { %v179_v61 = vpop.f32.mrf.mxu3 }
  0xc2   :  { %v219_v62 = vadd.f32 %v179_v61, %v104_v46  ;;  %v250_v34 = vmul.f32 1.2533141, %v246_v30  ;;  %v345_v46 = vld [vmem:[%s888_s6 + $0x8] sm:$0xff] }
  0xc3   :  { %378 = vmatpush.msra.mxu0 %v345_v46  ;;  %561 = vmatpush.msrb.mxu2 %v345_v46 }
  0xc4   :  { %v221_v0 = vadd.f32 %v219_v62, %v213_v59 }
  0xc5   :  { %379 = vmatpush.msra.mxu0 %v344_v47  ;;  %562 = vmatpush.msrb.mxu2 %v344_v47 }
  0xc6   :  { %v227_v2 = vmul.f32 %v221_v0, %v221_v0  ;;  %v231_v25 = vmul.f32 0.5, %v221_v0 }
  0xc8   :  { %v235_v5 = vmul.f32 0.044715, %v227_v2 }
  0xc9   :  { %v182_v7 = vpop.f32.mrf.mxu3 }
  0xca   :  { %v239_v8 = vadd.f32 1.0, %v235_v5  ;;  %v220_v9 = vadd.f32 %v182_v7, %v107_v54 }
  0xcc   :  { %v222_v12 = vadd.f32 %v220_v9, %v216_v6  ;;  %v243_v13 = vmul.f32 %v239_v8, %v221_v0 }
  0xce   :  { %v228_v14 = vmul.f32 %v222_v12, %v222_v12  ;;  %v247_v15 = vmul.f32 1.2533141, %v243_v13  ;;  %v232_v32 = vmul.f32 0.5, %v222_v12 }
  0xd0   :  { %v236_v18 = vmul.f32 0.044715, %v228_v14  ;;  %574 = vtanh.f32 %v247_v15 }
  0xd2   :  { %v240_v19 = vadd.f32 1.0, %v236_v18 }
  0xd4   :  { %v244_v21 = vmul.f32 %v240_v19, %v222_v12 }
  0xd6   :  { %v575_v23 = vpop.eup %574  ;;  %v248_v24 = vmul.f32 1.2533141, %v244_v21 }
  0xd7   :  { %v255_v26 = vadd.f32 1.0, %v575_v23 }
  0xd8   :  { %576 = vtanh.f32 %v248_v24  ;;  %v573_v24 = vld [vmem:[%s889_s7] ss:$0 sm:$0xff]  ;;  %s661_s7 = smov 32  }
  0xd9   :  { %v259_v29 = vmul.f32 %v255_v26, %v231_v25  ;;  %578 = vtanh.f32 %v249_v28 }
  0xda   :  { %580 = vtanh.f32 %v250_v34 }
  0xdb   :  { %295 = vmatmul.f32.vlgmr.msra.gmra.mxu1 %v259_v29 }
  0xde   :  { %v577_v31 = vpop.eup %576 }
  0xdf   :  { %v256_v33 = vadd.f32 1.0, %v577_v31  ;;  %v579_v36 = vpop.eup %578 }
  0xe0   :  { %v257_v37 = vadd.f32 1.0, %v579_v36  ;;  %v581_v40 = vpop.eup %580 }
  0xe1   :  { %v260_v35 = vmul.f32 %v256_v33, %v232_v32  ;;  %v258_v41 = vadd.f32 1.0, %v581_v40 }
  0xe2   :  { %v261_v39 = vmul.f32 %v257_v37, %v233_v38 }
  0xe3   :  { %298 = vmatmul.f32.gmra.mxu1 %v260_v35  ;;  %v262_v43 = vmul.f32 %v258_v41, %v234_v42 }
  0xeb   :  { %301 = vmatmul.f32.gmra.mxu1 %v261_v39 }
  0xf3   :  { %304 = vmatmul.f32.gmra.mxu1 %v262_v43 }
 0x158   :  { %v296_v48 = vpop.f32.mrf.mxu1 }
 0x159   :  { %v308_v49 = vmul.f32 %v296_v48, %v296_v48  ;;  %v312_v63 = vmul.f32 0.5, %v296_v48 }
 0x15b   :  { %v316_v50 = vmul.f32 0.044715, %v308_v49 }
 0x15d   :  { %v320_v51 = vadd.f32 1.0, %v316_v50 }
 0x15f   :  { %v324_v52 = vmul.f32 %v320_v51, %v296_v48 }
 0x160   :  { %v299_v53 = vpop.f32.mrf.mxu1 }
 0x161   :  { %v328_v54 = vmul.f32 1.2533141, %v324_v52  ;;  %v309_v55 = vmul.f32 %v299_v53, %v299_v53  ;;  %v313_v9 = vmul.f32 0.5, %v299_v53 }
 0x163   :  { %582 = vtanh.f32 %v328_v54  ;;  %v317_v56 = vmul.f32 0.044715, %v309_v55 }
 0x165   :  { %v321_v57 = vadd.f32 1.0, %v317_v56 }
 0x167   :  { %v325_v58 = vmul.f32 %v321_v57, %v299_v53 }
 0x168   :  { %v302_v59 = vpop.f32.mrf.mxu1 }
 0x169   :  { %v583_v60 = vpop.eup %582  ;;  %v329_v61 = vmul.f32 1.2533141, %v325_v58  ;;  %v310_v62 = vmul.f32 %v302_v59, %v302_v59  ;;  %v314_v17 = vmul.f32 0.5, %v302_v59 }
 0x16a   :  { %v336_v0 = vadd.f32 1.0, %v583_v60 }
 0x16b   :  { %584 = vtanh.f32 %v329_v61  ;;  %v318_v1 = vmul.f32 0.044715, %v310_v62 }
 0x16c   :  { %v340_v2 = vmul.f32 %v336_v0, %v312_v63 }
 0x16d   :  { %v322_v3 = vadd.f32 1.0, %v318_v1 }
 0x16e   :  { %490 = vst.msk [vmem:[#allocation5] sm:$0xff] %vm189_vm1, %v340_v2  ;;  %555 = vmatmul.msk.f32.vlgmr.msra.gmra.mxu0 %vm189_vm1, %v340_v2 }
 0x16f   :  { %v326_v4 = vmul.f32 %v322_v3, %v302_v59 }
 0x170   :  { %v305_v5 = vpop.f32.mrf.mxu1 }
 0x171   :  { %v585_v6 = vpop.eup %584  ;;  %v330_v7 = vmul.f32 1.2533141, %v326_v4  ;;  %v311_v8 = vmul.f32 %v305_v5, %v305_v5  ;;  %v315_v21 = vmul.f32 0.5, %v305_v5 }
 0x172   :  { %v337_v10 = vadd.f32 1.0, %v585_v6 }
 0x173   :  { %586 = vtanh.f32 %v330_v7  ;;  %v319_v11 = vmul.f32 0.044715, %v311_v8 }
 0x174   :  { %v341_v12 = vmul.f32 %v337_v10, %v313_v9 }
 0x175   :  { %v323_v13 = vadd.f32 1.0, %v319_v11 }
 0x176   :  { %491 = vst.msk [vmem:[#allocation5 + $0x8] sm:$0xff] %vm189_vm1, %v341_v12  ;;  %556 = vmatmul.msk.f32.vlgmr.msrb.gmra.mxu2 %vm189_vm1, %v341_v12 }
 0x177   :  { %v327_v14 = vmul.f32 %v323_v13, %v305_v5 }
 0x179   :  { %v587_v15 = vpop.eup %586  ;;  %v331_v16 = vmul.f32 1.2533141, %v327_v14 }
 0x17a   :  { %v338_v18 = vadd.f32 1.0, %v587_v15 }
 0x17b   :  { %588 = vtanh.f32 %v331_v16 }
 0x17c   :  { %v342_v19 = vmul.f32 %v338_v18, %v314_v17 }
 0x17e   :  { %557 = vmatmul.msk.f32.gmra.mxu2 %vm189_vm1, %v342_v19 }
 0x181   :  { %v589_v20 = vpop.eup %588 }
 0x182   :  { %v339_v22 = vadd.f32 1.0, %v589_v20 }
 0x184   :  { %v343_v23 = vmul.f32 %v339_v22, %v315_v21 }
 0x186   :  { %558 = vmatmul.msk.f32.gmra.mxu2 %vm189_vm1, %v343_v23 }
 0x1eb   :  { %v381_v25 = vpop.f32.mrf.mxu0 }
 0x1ec   :  { %v382_v26 = vadd.f32 %v573_v24, %v381_v25 }
 0x1ee   :  { %v394_v27 = vsel %vm393_vm2, %v382_v26, -inf }
 0x1ef   :  { %395 = vmax.xlane.f32.xlu0 %v394_v27 }
 0x1f9   :  { %v384_v28 = vpop.f32.mrf.mxu2 }
 0x1fa   :  { %v385_v29 = vadd.f32 %v573_v24, %v384_v28 }
 0x1fc   :  { %v397_v30 = vsel %vm393_vm2, %v385_v29, -inf }
 0x1fd   :  { %398 = vmax.xlane.f32.xlu0 %v397_v30 }
 0x201   :  { %v387_v31 = vpop.f32.mrf.mxu2 }
 0x202   :  { %v388_v32 = vadd.f32 %v573_v24, %v387_v31 }
 0x204   :  { %v400_v33 = vsel %vm393_vm2, %v388_v32, -inf }
 0x205   :  { %401 = vmax.xlane.f32.xlu1 %v400_v33 }
 0x209   :  { %v390_v34 = vpop.f32.mrf.mxu2 }
 0x20a   :  { %v391_v35 = vadd.f32 %v573_v24, %v390_v34 }
 0x20c   :  { %v403_v36 = vsel %vm393_vm2, %v391_v35, -inf }
 0x20d   :  { %404 = vmax.xlane.f32.xlu1 %v403_v36 }
 0x262   :  { %v396_v37 = vpop.xlane.xlu0 %395 }
 0x263   :  { %v406_v38 = vsub.f32 %v382_v26, %v396_v37 }
 0x265   :  { %v410_v39 = vmul.f32 1.442695, %v406_v38 }
 0x267   :  { %590 = vpow2.f32 %v410_v39 }
 0x26d   :  { %v591_v40 = vpop.eup %590 }
 0x26e   :  { %v418_v41 = vsel %vm393_vm2, %v591_v40, 0.0 }
 0x26f   :  { %419 = vadd.xlane.f32.xlu2 %v418_v41 }
 0x270   :  { %v399_v42 = vpop.xlane.xlu0 %398 }
 0x271   :  { %v407_v43 = vsub.f32 %v385_v29, %v399_v42 }
 0x273   :  { %v412_v44 = vmul.f32 1.442695, %v407_v43 }
 0x275   :  { %592 = vpow2.f32 %v412_v44 }
 0x278   :  { %v402_v45 = vpop.xlane.xlu1 %401 }
 0x279   :  { %v408_v46 = vsub.f32 %v388_v32, %v402_v45 }
 0x27b   :  { %v862_v47 = vpop.eup %592  ;;  %v414_v48 = vmul.f32 1.442695, %v408_v46  ;;  %v664_v46 = vmov 0.0  }
 0x27c   :  { %v421_v49 = vsel %vm393_vm2, %v862_v47, 0.0 }
 0x27d   :  { %594 = vpow2.f32 %v414_v48  ;;  %422 = vadd.xlane.f32.xlu2 %v421_v49 }
 0x280   :  { %v405_v50 = vpop.xlane.xlu1 %404 }
 0x281   :  { %v409_v51 = vsub.f32 %v391_v35, %v405_v50 }
 0x283   :  { %v866_v52 = vpop.eup %594  ;;  %v416_v53 = vmul.f32 1.442695, %v409_v51 }
 0x284   :  { %v424_v54 = vsel %vm393_vm2, %v866_v52, 0.0 }
 0x285   :  { %596 = vpow2.f32 %v416_v53  ;;  %425 = vadd.xlane.f32.xlu0 %v424_v54 }
 0x28b   :  { %v870_v55 = vpop.eup %596 }
 0x28c   :  { %v427_v56 = vsel %vm393_vm2, %v870_v55, 0.0 }
 0x28d   :  { %428 = vadd.xlane.f32.xlu1 %v427_v56 }
 0x295   :  { %492 = vrot.lane.b32.xlu2 %v342_v19, %s661_s7 }
 0x299   :  { %494 = vrot.lane.b32.xlu0 %v343_v23, %s661_s7 }
 0x2e2   :  { %v420_v57 = vpop.xlane.xlu2 %419 }
 0x2e3   :  { %598 = vrcp.f32 %v420_v57  ;;  %v441_v61 = vand.u32 2147483648, %v420_v57  ;;  %v439_v63 = vand.u32 2147483647, %v420_v57  ;;  %vm435_vm4 = vweird.f32 %v420_v57 }
 0x2e5   :  { %v442_v2 = vor.u32 1.1754944e-38, %v441_v61  ;;  %vm440_vm6 = vcmp.eq.f32.partialorder %v439_v63, 8.507059e+37 }
 0x2e9   :  { %v599_v58 = vpop.eup %598 }
 0x2ea   :  { %v431_v59 = vmul.f32 %v599_v58, %v420_v57  ;;  %vm436_vm3 = vweird.f32 %v599_v58 }
 0x2eb   :  { %vm437_vm5 = vmor %vm435_vm4, %vm436_vm3  ;;  %vm509_vm4 = vcmask 589312  }
 0x2ec   :  { %v432_v60 = vsub.f32 1.0, %v431_v59 }
 0x2ee   :  { %v433_v62 = vmul.f32 %v599_v58, %v432_v60 }
 0x2f0   :  { %v423_v0 = vpop.xlane.xlu2 %422  ;;  %v434_v1 = vadd.f32 %v599_v58, %v433_v62 }
 0x2f1   :  { %600 = vrcp.f32 %v423_v0  ;;  %v455_v11 = vand.u32 2147483648, %v423_v0  ;;  %v453_v13 = vand.u32 2147483647, %v423_v0  ;;  %vm449_vm9 = vweird.f32 %v423_v0 }
 0x2f2   :  { %v438_v3 = vsel %vm437_vm5, %v599_v58, %v434_v1  ;;  %vm520_vm5 = vcmask 654912  }
 0x2f3   :  { %v443_v4 = vsel %vm440_vm6, %v442_v2, %v438_v3  ;;  %v456_v16 = vor.u32 1.1754944e-38, %v455_v11  ;;  %vm454_vm11 = vcmp.eq.f32.partialorder %v453_v13, 8.507059e+37  ;;  %vm523_vm6 = vcmask 1048192  }
 0x2f4   :  { %v486_v5 = vmul.f32 %v591_v40, %v443_v4 }
 0x2f6   :  { %503 = vrot.lane.b32.xlu1 %v486_v5, %s662_s17 }
 0x2f7   :  { %v601_v6 = vpop.eup %600 }
 0x2f8   :  { %v445_v7 = vmul.f32 %v601_v6, %v423_v0  ;;  %v493_v8 = vpop.permute.xlu2 %492  ;;  %v426_v9 = vpop.xlane.xlu0 %425  ;;  %vm450_vm8 = vweird.f32 %v601_v6 }
 0x2f9   :  { %499 = vst.msk [vmem:[#allocation5] sm:$0xff] %vm498_vm7, %v493_v8  ;;  %602 = vrcp.f32 %v426_v9  ;;  %vm451_vm10 = vmor %vm449_vm9, %vm450_vm8  ;;  %v469_v23 = vand.u32 2147483648, %v426_v9  ;;  %v467_v25 = vand.u32 2147483647, %v426_v9  ;;  %vm463_vm13 = vweird.f32 %v426_v9 }
 0x2fa   :  { %v446_v10 = vsub.f32 1.0, %v445_v7 }
 0x2fb   :  { %v470_v28 = vor.u32 1.1754944e-38, %v469_v23  ;;  %vm468_vm15 = vcmp.eq.f32.partialorder %v467_v25, 8.507059e+37 }
 0x2fc   :  { %v447_v12 = vmul.f32 %v601_v6, %v446_v10 }
 0x2fe   :  { %v448_v14 = vadd.f32 %v601_v6, %v447_v12 }
 0x2ff   :  { %v603_v15 = vpop.eup %602 }
 0x300   :  { %v459_v17 = vmul.f32 %v603_v15, %v426_v9  ;;  %v429_v18 = vpop.xlane.xlu1 %428  ;;  %v452_v19 = vsel %vm451_vm10, %v601_v6, %v448_v14  ;;  %vm464_vm12 = vweird.f32 %v603_v15 }
 0x301   :  { %604 = vrcp.f32 %v429_v18  ;;  %v457_v20 = vsel %vm454_vm11, %v456_v16, %v452_v19  ;;  %vm465_vm14 = vmor %vm463_vm13, %vm464_vm12  ;;  %v483_v34 = vand.u32 2147483648, %v429_v18  ;;  %v481_v37 = vand.u32 2147483647, %v429_v18 }
 0x302   :  { %v460_v21 = vsub.f32 1.0, %v459_v17  ;;  %v487_v22 = vmul.f32 %v862_v47, %v457_v20  ;;  %vm477_vm1 = vweird.f32 %v429_v18 }
 0x303   :  { %v484_v39 = vor.u32 1.1754944e-38, %v483_v34  ;;  %vm482_vm3 = vcmp.eq.f32.partialorder %v481_v37, 8.507059e+37 }
 0x304   :  { %v461_v24 = vmul.f32 %v603_v15, %v460_v21  ;;  %505 = vrot.lane.b32.xlu2 %v487_v22, %s662_s17 }
 0x306   :  { %v462_v26 = vadd.f32 %v603_v15, %v461_v24 }
 0x307   :  { %v605_v27 = vpop.eup %604 }
 0x308   :  { %v473_v29 = vmul.f32 %v605_v27, %v429_v18  ;;  %v466_v30 = vsel %vm465_vm14, %v603_v15, %v462_v26  ;;  %vm478_vm0 = vweird.f32 %v605_v27 }
 0x309   :  { %v471_v31 = vsel %vm468_vm15, %v470_v28, %v466_v30  ;;  %vm479_vm2 = vmor %vm477_vm1, %vm478_vm0 }
 0x30a   :  { %v474_v32 = vsub.f32 1.0, %v473_v29  ;;  %v488_v33 = vmul.f32 %v866_v52, %v471_v31 }
 0x30b   :  { %v495_v35 = vpop.permute.xlu0 %494 }
 0x30c   :  { %v475_v36 = vmul.f32 %v605_v27, %v474_v32  ;;  %500 = vst.msk [vmem:[#allocation5 + $0x8] sm:$0xff] %vm498_vm7, %v495_v35  ;;  %514 = vrot.lane.b32.xlu0 %v488_v33, %s663_s18 }
 0x30e   :  { %v476_v38 = vadd.f32 %v605_v27, %v475_v36 }
 0x310   :  { %v480_v40 = vsel %vm479_vm2, %v605_v27, %v476_v38 }
 0x311   :  { %v485_v41 = vsel %vm482_vm3, %v484_v39, %v480_v40 }
 0x312   :  { %v489_v42 = vmul.f32 %v870_v55, %v485_v41 }
 0x314   :  { %516 = vrot.lane.b32.xlu2 %v489_v42, %s663_s18 }
 0x35e   :  { %v506_v43 = vpop.permute.xlu2 %505 }
 0x35f   :  { %511 = vst.msk [vmem:[#allocation5 + $0x8] sm:$0xff] %vm509_vm4, %v506_v43 }
 0x368   :  { %v504_v44 = vpop.permute.xlu1 %503 }
 0x369   :  { %510 = vst.msk [vmem:[#allocation5] sm:$0xff] %vm509_vm4, %v504_v44 }
 0x36e   :  { %v517_v45 = vpop.permute.xlu2 %516 }
 0x36f   :  { %522 = vst.msk [vmem:[#allocation5 + $0x8] sm:$0xff] %vm520_vm5, %v517_v45 }
 0x370   :  { %525 = vst.msk [vmem:[#allocation5 + $0x8] sm:$0xff] %vm523_vm6, %v664_v46 }
 0x37e   :  { %v515_v47 = vpop.permute.xlu0 %514 }
 0x37f   :  { %521 = vst.msk [vmem:[#allocation5] sm:$0xff] %vm520_vm5, %v515_v47 }
 0x380   :  { %524 = vst.msk [vmem:[#allocation5] sm:$0xff] %vm523_vm6, %v664_v46 }
 0x381   :  { %538 = dma.vmem_to_hbm [thread:$0]  %s531_s20, 256, %s533_s23, [#allocation4], %s666_s24, %s666_s24, %s667_s25  }
 0x382   :  { %656 = dma.done.wait [#allocation4], 256  }
 0x383   :  { %657 = vsyncadd [#allocation4], 4294967040 }
 0x384   :  { %543 = vsyncpa [#allocation3], 1 }
 0x385   :  { %544 = vsyncpa [#allocation4], 1 }

</bundles_post_ra>
